<compile_context>
chip_gen: v5e
topology: v5e:2x2
jax: 0.10.0
libtpu: 0.0.40
codegen_flags: <defaults>
</compile_context>

<pallas_src>
import math

import jax
import jax.numpy as jnp
from jax.experimental import pallas as pl
from jax.experimental.pallas import tpu as pltpu


# --------------------------------------------------------------------------- #
# Linear projection kernel: y = x @ W + b  (W stored as (in, out) = torch W.T).
# Row-tiled grid; weights/bias resident.  Optional bf16 inputs, f32 accumulate.
# --------------------------------------------------------------------------- #
def _linear_kernel(x_ref, w_ref, b_ref, o_ref):
    o_ref[...] = (
        jnp.dot(x_ref[...], w_ref[...], preferred_element_type=jnp.float32)
        + b_ref[...]
    ).astype(o_ref.dtype)


def _row_block(m, pref):
    if m <= pref:
        return m
    for cand in (pref, 1024, 512, 256, 128, 64, 32, 16, 8):
        if cand <= m and m % cand == 0:
            return cand
    return m


def linear_pallas(x2d, w, b, *, block_rows=512, bf16_inputs=False):
    m, k = x2d.shape
    n = w.shape[1]
    if bf16_inputs:
        x2d = x2d.astype(jnp.bfloat16)
        w = w.astype(jnp.bfloat16)
    bm = _row_block(m, block_rows)
    return pl.pallas_call(
        _linear_kernel,
        out_shape=jax.ShapeDtypeStruct((m, n), jnp.float32),
        grid=(m // bm,),
        in_specs=[
            pl.BlockSpec((bm, k), lambda i: (i, 0)),
            pl.BlockSpec((k, n), lambda i: (0, 0)),   # weights resident
            pl.BlockSpec((1, n), lambda i: (0, 0)),   # bias resident
        ],
        out_specs=pl.BlockSpec((bm, n), lambda i: (i, 0)),
        compiler_params=pltpu.CompilerParams(dimension_semantics=("parallel",)),
    )(x2d, w, b.reshape(1, n))


# --------------------------------------------------------------------------- #
# Core deformable-sampling kernel.
# grid = (B, num_query_tiles).  Per grid step:
#   - value block (1, Nv, C) stays resident across the query-tile axis,
#   - for each head (static loop -> static lane slices of value / output):
#       joint softmax over L*K (lane-dense in Nq),
#       vectorized bilinear corner indices/coefficients for all L*K points,
#       per-level accumulation of A^T = (bilinear * attention) into VMEM scratch,
#       one fused MXU contraction (Nv, TQ)^T @ (Nv, hd) -> (TQ, hd),
#       lane-dense store into the head's static C-column slice of the (TQ, C) block.
# --------------------------------------------------------------------------- #
def _make_msda_core_kernel(spatial_shapes, level_starts, L, K, M, hd):
    LK = L * K

    def kernel(lx_ref, ly_ref, attn_ref, val_ref, out_ref, a_ref):
        tq = lx_ref.shape[-1]

        # Per-row (level) sizes, built from iota + scalar constants (hoisted out of
        # the head loop).  Row r = lvl*K + k.
        row_lvl = jax.lax.broadcasted_iota(jnp.int32, (LK, tq), 0) // K
        wls = jnp.zeros((LK, tq), jnp.float32)
        hls = jnp.zeros((LK, tq), jnp.float32)
        for lvl, (Hl, Wl) in enumerate(spatial_shapes):
            in_lvl = row_lvl == lvl
            wls = jnp.where(in_lvl, float(Wl), wls)
            hls = jnp.where(in_lvl, float(Hl), hls)
        wli = wls.astype(jnp.int32)
        hli = hls.astype(jnp.int32)

        # Per-level pixel iotas (reused by every head).
        p_iotas = [jax.lax.broadcasted_iota(jnp.int32, (Hl * Wl, tq), 0)
                   for (Hl, Wl) in spatial_shapes]

        for m in range(M):       # static head loop -> static lane slices
            # ---- joint softmax over the L*K axis, per query (lane-dense) -------
            logits = attn_ref[0, m]                                   # (LK, tq)
            ex = jnp.exp(logits - jnp.max(logits, axis=0, keepdims=True))
            den = jnp.sum(ex, axis=0, keepdims=True)
            aw = ex * pl.reciprocal(den, approx=True)                 # (LK, tq)

            # ---- vectorized bilinear setup for ALL L*K points at once ----------
            # F.grid_sample(align_corners=False): pix = loc*size - 0.5
            x = lx_ref[0, m] * wls - 0.5                              # (LK, tq)
            y = ly_ref[0, m] * hls - 0.5
            x0f = jnp.floor(x)
            y0f = jnp.floor(y)
            x0 = x0f.astype(jnp.int32)
            y0 = y0f.astype(jnp.int32)
            tx = x - x0f
            ty = y - y0f

            pix_c, coeff_c = [], []
            for dy in (0, 1):
                yi = y0 + dy
                y_ok = (yi >= 0) & (yi < hli)
                yc = jnp.clip(yi, 0, hli - 1)
                wy = ty if dy else (1.0 - ty)
                for dx in (0, 1):
                    xi = x0 + dx
                    ok = y_ok & (xi >= 0) & (xi < wli)
                    xc = jnp.clip(xi, 0, wli - 1)
                    wx = tx if dx else (1.0 - tx)
                    pix_c.append(yc * wli + xc)                       # (LK, tq)
                    # zeros padding outside the map, exactly like grid_sample
                    coeff_c.append(jnp.where(ok, wx * wy * aw, 0.0))  # (LK, tq)

            # ---- build A^T (Nv, tq) level-by-level directly in VMEM scratch ----
            for lvl in range(L):
                Hl, Wl = spatial_shapes[lvl]
                P = Hl * Wl
                start = level_starts[lvl]
                a_blk = jnp.zeros((P, tq), jnp.float32)
                for k in range(K):
                    r = lvl * K + k
                    for c in range(4):
                        a_blk = a_blk + jnp.where(
                            p_iotas[lvl] == pix_c[c][r:r + 1, :],
                            coeff_c[c][r:r + 1, :], 0.0)
                a_ref[start:start + P, :] = a_blk.astype(a_ref.dtype)

            # ---- one fused MXU contraction per head (f32 accumulation) ---------
            vh = val_ref[0, :, m * hd:(m + 1) * hd]                   # (Nv, hd)
            out_m = jax.lax.dot_general(
                a_ref[...], vh, (((0,), (0,)), ((), ())),
                preferred_element_type=jnp.float32)                   # (tq, hd)
            # Lane-dense output block: static C-column slice per head; the whole
            # (tq, C) block is written back to HBM once per (batch, query-tile).
            out_ref[0, :, m * hd:(m + 1) * hd] = out_m.astype(out_ref.dtype)

    return kernel


# --------------------------------------------------------------------------- #
# Full forward (mirrors MultiScaleDeformableAttention.forward, eval mode)
# --------------------------------------------------------------------------- #
def multiscale_deformable_attention(
    params,
    query,                    # (B, Nq, C)
    reference_points,         # (B, Nq, 2) or (B, Nq, L, 2)
    value,                    # (B, Nv, C)
    value_spatial_shapes,     # list of (H, W), static
    value_level_start_index,  # (L,) int -- implied by spatial_shapes (cumulative)
    value_padding_mask=None,  # optional (B, Nv) bool
    *,
    num_heads,
    num_levels,
    num_points,
    use_bf16_mxu=True,        # bf16 MXU inputs / bf16 value DMA, f32 accumulation
    query_block=128,          # Nq tile size (used when it divides Nq)
):
    bs, Nq, C = query.shape
    _, Nv, _ = value.shape
    M, L, K = num_heads, num_levels, num_points
    hd = C // M
    LK = L * K
    spatial_shapes = tuple((int(H), int(W)) for H, W in value_spatial_shapes)
    assert sum(H * W for H, W in spatial_shapes) == Nv
    assert len(spatial_shapes) == L
    level_starts, acc = [], 0
    for (H, W) in spatial_shapes:
        level_starts.append(acc)
        acc += H * W
    # Level start offsets are the static cumulative sums of H*W (same contract the
    # reference relies on for its contiguous per-level slicing).
    del value_level_start_index

    # ---- value projection (largest matmul; bf16 inputs when enabled) ----------
    v = linear_pallas(value.reshape(bs * Nv, C),
                      params["value_w"], params["value_b"],
                      bf16_inputs=use_bf16_mxu).reshape(bs, Nv, C)
    if value_padding_mask is not None:
        v = jnp.where(value_padding_mask[..., None], 0.0, v)
    v = v.astype(jnp.bfloat16 if use_bf16_mxu else jnp.float32)   # halves value DMA

    # ---- fused sampling-offset + attention-weight projection ------------------
    # The reference flattens sampled values point-major (i = k*L + l) but attention
    # weights level-major (i = l*K + k), so the raw logit column applied to sample
    # (lvl, k) is column k*L + lvl (within head m).  Permute the attention weight
    # COLUMNS once so the kernel's (lvl*K + k)-indexed weight matches the reference
    # exactly; softmax over the full L*K set is permutation-equivariant.
    perm = [m * LK + k * L + l for m in range(M) for l in range(L) for k in range(K)]
    perm = jnp.asarray(perm, jnp.int32)
    attn_w = params["attn_w"][:, perm]
    attn_b = params["attn_b"][perm]
    w_cat = jnp.concatenate([params["off_w"], attn_w], axis=1)
    b_cat = jnp.concatenate([params["off_b"], attn_b], axis=0)
    oa = linear_pallas(query.reshape(bs * Nq, C), w_cat, b_cat)
    n_off = M * LK * 2
    off = oa[:, :n_off].reshape(bs, Nq, M, L, K, 2)
    attn_logits = oa[:, n_off:].reshape(bs, Nq, M, LK)

    # ---- sampling locations (reference clamps to [0,1] before grid_sample) ----
    if reference_points.ndim == 3:
        ref = jnp.broadcast_to(reference_points[:, :, None, :], (bs, Nq, L, 2))
    elif reference_points.ndim == 4 and reference_points.shape[2] == L:
        ref = reference_points
    else:
        raise ValueError(f"bad reference_points shape {reference_points.shape}")
    loc = jnp.clip(ref[:, :, None, :, None, :] + off, 0.0, 1.0)   # (B,Nq,M,L,K,2)

    # Lane-dense layouts: Nq last (lane) axis, row index r = lvl*K + k.
    loc_x = jnp.transpose(loc[..., 0], (0, 2, 3, 4, 1)).reshape(bs, M, LK, Nq)
    loc_y = jnp.transpose(loc[..., 1], (0, 2, 3, 4, 1)).reshape(bs, M, LK, Nq)
    attn_s = jnp.transpose(attn_logits, (0, 2, 3, 1))             # (B, M, LK, Nq)

    # ---- Nq tiling + explicit VMEM budget --------------------------------------
    tq = query_block if (Nq % query_block == 0) else Nq
    n_qt = Nq // tq
    acc_dt = jnp.bfloat16 if use_bf16_mxu else jnp.float32
    vbytes = 2 if use_bf16_mxu else 4
    tq_pad, lk_pad, c_pad = max(tq, 128), max(LK, 8), max(C, 128)
    est = (2 * Nv * c_pad * vbytes                 # value block (double-buffered)
           + 2 * 3 * M * lk_pad * tq_pad * 4       # loc_x / loc_y / attn blocks
           + Nv * tq_pad * vbytes                  # A^T scratch
           + 2 * tq_pad * c_pad * 4)               # output block
    # Clamp to 64 MiB (v7x physical); on v5e/v6e (128 MiB) this can be raised.
    vmem_limit = int(min(64 * 2**20, max(32 * 2**20, 2 * est)))

    kernel = _make_msda_core_kernel(spatial_shapes, tuple(level_starts), L, K, M, hd)
    out_std = pl.pallas_call(
        kernel,
        out_shape=jax.ShapeDtypeStruct((bs, Nq, C), jnp.float32),
        grid=(bs, n_qt),
        in_specs=[
            pl.BlockSpec((1, M, LK, tq), lambda b, q: (b, 0, 0, q)),
            pl.BlockSpec((1, M, LK, tq), lambda b, q: (b, 0, 0, q)),
            pl.BlockSpec((1, M, LK, tq), lambda b, q: (b, 0, 0, q)),
            # value block resident across the query-tile axis (index_map ignores q).
            pl.BlockSpec((1, Nv, C), lambda b, q: (b, 0, 0)),
        ],
        out_specs=pl.BlockSpec((1, tq, C), lambda b, q: (b, q, 0)),
        scratch_shapes=[pltpu.VMEM((Nv, tq), acc_dt)],
        compiler_params=pltpu.CompilerParams(
            dimension_semantics=("parallel", "arbitrary"),
            vmem_limit_bytes=vmem_limit),
    )(loc_x, loc_y, attn_s, v)

    # Kernel output columns are head-major [q, m*hd + d].  The reference instead does
    # (B*M, hd, Nq).permute(0,2,1).reshape(B, Nq, C), i.e. the row-major reinterpret
    # of (B, M, Nq, hd) -- reproduce that exact head/query interleave here.
    out = (out_std.reshape(bs, Nq, M, hd)
           .transpose(0, 2, 1, 3)
           .reshape(bs, Nq, C))

    out = linear_pallas(out.reshape(bs * Nq, C),
                        params["out_w"], params["out_b"]).reshape(bs, Nq, C)
    # TODO(synk): nn.Dropout(p=0.1) is stochastic training-time behaviour; identity
    # here (eval mode).
    return out


# --------------------------------------------------------------------------- #
# Pure-JAX (non-Pallas) port of the PyTorch forward, used as numerical reference.
# --------------------------------------------------------------------------- #
def _grid_sample_bilinear_zeros(img, grid):
    # img: (N, C, H, W); grid: (N, Hg, Wg, 2) in [-1, 1]; align_corners=False.
    N, Cc, H, W = img.shape
    gx, gy = grid[..., 0], grid[..., 1]
    ix = (gx + 1.0) * (W * 0.5) - 0.5
    iy = (gy + 1.0) * (H * 0.5) - 0.5
    x0f, y0f = jnp.floor(ix), jnp.floor(iy)
    tx, ty = ix - x0f, iy - y0f
    x0, y0 = x0f.astype(jnp.int32), y0f.astype(jnp.int32)
    imgf = img.reshape(N, Cc, H * W)

    def corner(xi, yi, wgt):
        ok = (xi >= 0) & (xi < W) & (yi >= 0) & (yi < H)
        flat = jnp.clip(yi, 0, H - 1) * W + jnp.clip(xi, 0, W - 1)
        g = jax.vmap(lambda a, i: jnp.take(a, i, axis=1))(imgf, flat.reshape(N, -1))
        g = g.reshape(N, Cc, *xi.shape[1:])
        return g * jnp.where(ok, wgt, 0.0)[:, None]

    return (corner(x0, y0, (1 - tx) * (1 - ty)) + corner(x0 + 1, y0, tx * (1 - ty))
            + corner(x0, y0 + 1, (1 - tx) * ty) + corner(x0 + 1, y0 + 1, tx * ty))


def msda_reference_jnp(params, query, reference_points, value, spatial_shapes,
                       *, num_heads, num_levels, num_points, value_padding_mask=None):
    bs, Nq, C = query.shape
    _, Nv, _ = value.shape
    M, L, K = num_heads, num_levels, num_points
    hd = C // M
    v = value @ params["value_w"] + params["value_b"]
    if value_padding_mask is not None:
        v = jnp.where(value_padding_mask[..., None], 0.0, v)
    v = v.reshape(bs, Nv, M, hd)
    off = (query @ params["off_w"] + params["off_b"]).reshape(bs, Nq, M, L, K, 2)
    aw = (query @ params["attn_w"] + params["attn_b"]).reshape(bs, Nq, M, L * K)
    aw = jax.nn.softmax(aw, axis=-1).reshape(bs, Nq, M, L, K)
    if reference_points.ndim == 3:
        ref = jnp.broadcast_to(reference_points[:, :, None, :], (bs, Nq, L, 2))
    else:
        ref = reference_points
    loc = jnp.clip(ref[:, :, None, :, None, :] + off, 0.0, 1.0)
    grid = loc * 2.0 - 1.0
    vperm = jnp.transpose(v, (0, 2, 3, 1))                    # (bs, M, hd, Nv)
    starts, acc = [], 0
    for (H, W) in spatial_shapes:
        starts.append(acc)
        acc += H * W
    sampled = []
    for lvl, (H, W) in enumerate(spatial_shapes):
        v_l = vperm[..., starts[lvl]:starts[lvl] + H * W].reshape(bs * M, hd, H, W)
        g_l = jnp.transpose(grid[:, :, :, lvl, :, :],
                            (0, 2, 1, 3, 4)).reshape(bs * M, Nq, K, 2)
        sampled.append(_grid_sample_bilinear_zeros(v_l, g_l))  # (bs*M, hd, Nq, K)
    sampled = jnp.stack(sampled, axis=-1).reshape(bs * M, hd, Nq, K * L)
    aw = jnp.transpose(aw, (0, 2, 1, 3, 4)).reshape(bs * M, Nq, L * K)
    out = (sampled * aw[:, None]).sum(-1)                     # (bs*M, hd, Nq)
    out = jnp.transpose(out, (0, 2, 1)).reshape(bs, Nq, C)
    return out @ params["out_w"] + params["out_b"]


# --------------------------------------------------------------------------- #
# Deterministic parameter init (shapes from the module's __init__)
# --------------------------------------------------------------------------- #
def init_params(key, C, M, L, K):
    k1, k2, k3, k4 = jax.random.split(key, 4)

    def xavier(k, fin, fout):
        bound = math.sqrt(6.0 / (fin + fout))
        return jax.random.uniform(k, (fin, fout), jnp.float32, -bound, bound)

    return {
        # NOTE: reference zero-inits sampling_offset_proj; small random weights are
        # used so the deformable-sampling path is actually exercised.
        "off_w": 0.05 * jax.random.normal(k1, (C, M * L * K * 2), jnp.float32),
        "off_b": jnp.zeros((M * L * K * 2,), jnp.float32),
        "attn_w": xavier(k2, C, M * L * K),
        "attn_b": jnp.zeros((M * L * K,), jnp.float32),
        "value_w": xavier(k3, C, C),
        "value_b": jnp.zeros((C,), jnp.float32),
        "out_w": xavier(k4, C, C),
        "out_b": jnp.zeros((C,), jnp.float32),
    }


if __name__ == "__main__":
    embed_dims, num_heads, num_levels, num_points = 32, 4, 2, 4
    bs, num_query = 2, 16
    spatial_shapes = [(8, 8), (4, 4)]
    num_value = sum(H * W for H, W in spatial_shapes)
    starts, acc = [], 0
    for H, W in spatial_shapes:
        starts.append(acc)
        acc += H * W
    level_start_index = jnp.array(starts, dtype=jnp.int32)

    key = jax.random.PRNGKey(0)
    kq, kr, kv, kp = jax.random.split(key, 4)
    query = jax.random.normal(kq, (bs, num_query, embed_dims), jnp.float32)
    reference_points = jax.random.uniform(kr, (bs, num_query, 2), jnp.float32)
    value = jax.random.normal(kv, (bs, num_value, embed_dims), jnp.float32)

    params = init_params(kp, embed_dims, num_heads, num_levels, num_points)
    common = dict(num_heads=num_heads, num_levels=num_levels, num_points=num_points)

    # Pure-JAX port of the torch forward (for numerical verification).
    ref_out = jax.block_until_ready(msda_reference_jnp(
        params, query, reference_points, value, spatial_shapes, **common))
    scale = float(jnp.maximum(1.0, jnp.max(jnp.abs(ref_out))))

    # Exact-f32 Pallas path, checked tightly against the reference.
    out_f32 = jax.block_until_ready(multiscale_deformable_attention(
        params, query, reference_points, value, spatial_shapes, level_start_index,
        None, use_bf16_mxu=False, **common))
    assert out_f32.shape == (bs, num_query, embed_dims)
    err_f32 = float(jnp.max(jnp.abs(out_f32 - ref_out)))
    assert err_f32 < 1e-2 * scale, f"f32 path mismatch: {err_f32}"

    # Default (bf16 MXU / bf16 value DMA, f32 accumulation) path, looser tolerance.
    out_bf16 = jax.block_until_ready(multiscale_deformable_attention(
        params, query, reference_points, value, spatial_shapes, level_start_index,
        None, **common))
    assert bool(jnp.all(jnp.isfinite(out_bf16)))
    err_bf16 = float(jnp.max(jnp.abs(out_bf16 - ref_out)))
    assert err_bf16 < 8e-2 * scale, f"bf16 path mismatch: {err_bf16}"

    print("KERNEL_OK")
</pallas_src>

<mosaic_0001>
module attributes {stable_mosaic.version = 11 : i64} {
  func.func @_linear_kernel(%arg0: i32, %arg1: memref<160x32xf32, #tpu.memory_space<vmem>>, %arg2: memref<32x32xf32, #tpu.memory_space<vmem>>, %arg3: memref<1x32xf32, #tpu.memory_space<vmem>>, %arg4: memref<160x32xf32, #tpu.memory_space<vmem>>) attributes {dimension_semantics = [#tpu.dimension_semantics<parallel>], iteration_bounds = array<i64: 1>, scalar_prefetch = 0 : i64, scratch_operands = 0 : i64, tpu.core_type = #tpu.core_type<tc>, window_params = [{transform_indices = @transform_0, window_bounds = array<i64: 160, 32>}, {pipeline_mode = #tpu.pipeline_mode<synchronous>, transform_indices = @transform_1, window_bounds = array<i64: 32, 32>}, {pipeline_mode = #tpu.pipeline_mode<synchronous>, transform_indices = @transform_2, window_bounds = array<i64: 1, 32>}, {transform_indices = @transform_3, window_bounds = array<i64: 160, 32>}]} {
    %c0 = arith.constant 0 : index
    %c0_0 = arith.constant 0 : index
    %0 = vector.load %arg1[%c0, %c0_0] : memref<160x32xf32, #tpu.memory_space<vmem>>, vector<160x32xf32>
    %c0_1 = arith.constant 0 : index
    %c0_2 = arith.constant 0 : index
    %1 = vector.load %arg2[%c0_1, %c0_2] : memref<32x32xf32, #tpu.memory_space<vmem>>, vector<32x32xf32>
    %cst = arith.constant dense<0.000000e+00> : vector<160x32xf32>
    %2 = tpu.matmul %0, %1, %cst {dimension_numbers = #tpu.dot_dimension_numbers<[1], [0], [0], [1], [0, 0, 1, 1], [], []>} : vector<160x32xf32>, vector<32x32xf32>, vector<160x32xf32> -> vector<160x32xf32>
    %c0_3 = arith.constant 0 : index
    %c0_4 = arith.constant 0 : index
    %3 = vector.load %arg3[%c0_3, %c0_4] : memref<1x32xf32, #tpu.memory_space<vmem>>, vector<1x32xf32>
    %4 = vector.broadcast %3 : vector<1x32xf32> to vector<160x32xf32>
    %5 = arith.addf %2, %4 : vector<160x32xf32>
    %c0_5 = arith.constant 0 : index
    %c0_6 = arith.constant 0 : index
    %6 = vector.load %arg4[%c0_5, %c0_6] : memref<160x32xf32, #tpu.memory_space<vmem>>, vector<160x32xf32>
    tpu.vector_store %arg4[%c0_5, %c0_6], %5 {strides = array<i32>} : memref<160x32xf32, #tpu.memory_space<vmem>>, vector<160x32xf32>,
    return
  }
  func.func @transform_0(%arg0: i32) -> (i32, i32) {
    %c0_i32 = arith.constant 0 : i32
    %c0_i32_0 = arith.constant 0 : i32
    return %arg0, %c0_i32 : i32, i32
  }
  func.func @transform_1(%arg0: i32) -> (i32, i32) {
    %c0_i32 = arith.constant 0 : i32
    %c0_i32_0 = arith.constant 0 : i32
    %c0_i32_1 = arith.constant 0 : i32
    return %c0_i32, %c0_i32_0 : i32, i32
  }
  func.func @transform_2(%arg0: i32) -> (i32, i32) {
    %c0_i32 = arith.constant 0 : i32
    %c0_i32_0 = arith.constant 0 : i32
    %c0_i32_1 = arith.constant 0 : i32
    return %c0_i32, %c0_i32_0 : i32, i32
  }
  func.func @transform_3(%arg0: i32) -> (i32, i32) {
    %c0_i32 = arith.constant 0 : i32
    %c0_i32_0 = arith.constant 0 : i32
    return %arg0, %c0_i32 : i32, i32
  }
}

</mosaic_0001>

<bundles_post_ra>
// kernel: tpu_custom_call.1
= control target key start
LH: loop header
LB: loop body
LE: loop exit
PB: predicated region body
PF: predicated region fallthrough
CT: control target
= control target key end

     0   :  { %vm42_vm0 = vcmask 261120   ;;  %s432_s1 = inlined_call_operand.vmem [shape: f32[32,32], index: 1, kind: input, shape index: {}]   ;;  %s433_s0 = inlined_call_operand.vmem [shape: f32[160,32], index: 0, kind: input, shape index: {}]   ;;  %s434_s2 = inlined_call_operand.vmem [shape: f32[1,32], index: 2, kind: input, shape index: {}]   ;;  %s435_s3 = inlined_call_operand.vmem [shape: f32[160,32], index: 3, kind: output, shape index: {}]  }
   0x1   :  { %v37_v0 = vld [vmem:[%s432_s1 + $0x18] sm:$0xff]  ;;  %v36_v1 = vld [vmem:[%s432_s1 + $0x10] sm:$0xff]  ;;  %v35_v2 = vld [vmem:[%s432_s1 + $0x8] sm:$0xff] }
   0x2   :  { %225 = vmatpush.msra.mxu2 %v37_v0  ;;  %226 = vmatpush.msra.mxu3 %v37_v0  ;;  %v34_v3 = vld [vmem:[%s432_s1] sm:$0xff]  ;;  %v24_v4 = vld [vmem:[%s433_s0 + $0x50] sm:$0xff]  ;;  %v29_v5 = vld [vmem:[%s433_s0 + $0x78] sm:$0xff] }
   0x3   :  { %115 = vmatpush.msra.mxu0 %v37_v0  ;;  %224 = vmatpush.msra.mxu1 %v37_v0  ;;  %v14_v6 = vld [vmem:[%s433_s0] sm:$0xff]  ;;  %v19_v7 = vld [vmem:[%s433_s0 + $0x28] sm:$0xff]  ;;  %v25_v8 = vld [vmem:[%s433_s0 + $0x58] sm:$0xff] }
   0x4   :  { %228 = vmatpush.msra.mxu2 %v36_v1  ;;  %229 = vmatpush.msra.mxu3 %v36_v1  ;;  %v30_v9 = vld [vmem:[%s433_s0 + $0x80] sm:$0xff]  ;;  %v15_v10 = vld [vmem:[%s433_s0 + $0x8] sm:$0xff]  ;;  %v20_v11 = vld [vmem:[%s433_s0 + $0x30] sm:$0xff] }
   0x5   :  { %116 = vmatpush.msra.mxu0 %v36_v1  ;;  %227 = vmatpush.msra.mxu1 %v36_v1  ;;  %v26_v12 = vld [vmem:[%s433_s0 + $0x60] sm:$0xff]  ;;  %v31_v13 = vld [vmem:[%s433_s0 + $0x88] sm:$0xff]  ;;  %v16_v14 = vld [vmem:[%s433_s0 + $0x10] sm:$0xff] }
   0x6   :  { %231 = vmatpush.msra.mxu2 %v35_v2  ;;  %232 = vmatpush.msra.mxu3 %v35_v2  ;;  %v21_v15 = vld [vmem:[%s433_s0 + $0x38] sm:$0xff]  ;;  %v27_v16 = vld [vmem:[%s433_s0 + $0x68] sm:$0xff]  ;;  %v32_v17 = vld [vmem:[%s433_s0 + $0x90] sm:$0xff] }
   0x7   :  { %117 = vmatpush.msra.mxu0 %v35_v2  ;;  %230 = vmatpush.msra.mxu1 %v35_v2  ;;  %v17_v18 = vld [vmem:[%s433_s0 + $0x18] sm:$0xff]  ;;  %v22_v19 = vld [vmem:[%s433_s0 + $0x40] sm:$0xff]  ;;  %v28_v20 = vld [vmem:[%s433_s0 + $0x70] sm:$0xff] }
   0x8   :  { %234 = vmatpush.msra.mxu2 %v34_v3  ;;  %235 = vmatpush.msra.mxu3 %v34_v3  ;;  %v33_v21 = vld [vmem:[%s433_s0 + $0x98] sm:$0xff]  ;;  %v18_v22 = vld [vmem:[%s433_s0 + $0x20] sm:$0xff]  ;;  %v23_v23 = vld [vmem:[%s433_s0 + $0x48] sm:$0xff] }
   0x9   :  { %214 = vmatmul.msk.f32.vlgmr.msra.gmra.mxu2 %vm42_vm0, %v24_v4  ;;  %219 = vmatmul.msk.f32.vlgmr.msra.gmra.mxu3 %vm42_vm0, %v29_v5  ;;  %v236_v24 = vld [vmem:[%s434_s2] ss:$0 sm:$0xff] }
   0xa   :  { %118 = vmatpush.msra.mxu0 %v34_v3  ;;  %233 = vmatpush.msra.mxu1 %v34_v3 }
   0xb   :  { %204 = vmatmul.msk.f32.vlgmr.msra.gmra.mxu0 %vm42_vm0, %v14_v6  ;;  %209 = vmatmul.msk.f32.vlgmr.msra.gmra.mxu1 %vm42_vm0, %v19_v7 }
  0x11   :  { %215 = vmatmul.msk.f32.gmra.mxu2 %vm42_vm0, %v25_v8  ;;  %220 = vmatmul.msk.f32.gmra.mxu3 %vm42_vm0, %v30_v9 }
  0x13   :  { %205 = vmatmul.msk.f32.gmra.mxu0 %vm42_vm0, %v15_v10  ;;  %210 = vmatmul.msk.f32.gmra.mxu1 %vm42_vm0, %v20_v11 }
  0x19   :  { %216 = vmatmul.msk.f32.gmra.mxu2 %vm42_vm0, %v26_v12  ;;  %221 = vmatmul.msk.f32.gmra.mxu3 %vm42_vm0, %v31_v13 }
  0x1b   :  { %206 = vmatmul.msk.f32.gmra.mxu0 %vm42_vm0, %v16_v14  ;;  %211 = vmatmul.msk.f32.gmra.mxu1 %vm42_vm0, %v21_v15 }
  0x21   :  { %217 = vmatmul.msk.f32.gmra.mxu2 %vm42_vm0, %v27_v16  ;;  %222 = vmatmul.msk.f32.gmra.mxu3 %vm42_vm0, %v32_v17 }
  0x23   :  { %207 = vmatmul.msk.f32.gmra.mxu0 %vm42_vm0, %v17_v18  ;;  %212 = vmatmul.msk.f32.gmra.mxu1 %vm42_vm0, %v22_v19 }
  0x29   :  { %218 = vmatmul.msk.f32.gmra.mxu2 %vm42_vm0, %v28_v20  ;;  %223 = vmatmul.msk.f32.gmra.mxu3 %vm42_vm0, %v33_v21 }
  0x2b   :  { %208 = vmatmul.msk.f32.gmra.mxu0 %vm42_vm0, %v18_v22  ;;  %213 = vmatmul.msk.f32.gmra.mxu1 %vm42_vm0, %v23_v23 }
  0x88   :  { %v120_v25 = vpop.f32.mrf.mxu0  ;;  %v135_v26 = vpop.f32.mrf.mxu1 }
  0x89   :  { %v121_v27 = vadd.f32 %v236_v24, %v120_v25  ;;  %v136_v28 = vadd.f32 %v236_v24, %v135_v26 }
  0x8b   :  { %180 = vst.msk [vmem:[%s435_s3] sm:$0xff] %vm42_vm0, %v121_v27 }
  0x8c   :  { %185 = vst.msk [vmem:[%s435_s3 + $0x28] sm:$0xff] %vm42_vm0, %v136_v28  ;;  %v150_v29 = vpop.f32.mrf.mxu2  ;;  %v165_v30 = vpop.f32.mrf.mxu3 }
  0x8d   :  { %v151_v31 = vadd.f32 %v236_v24, %v150_v29  ;;  %v166_v32 = vadd.f32 %v236_v24, %v165_v30 }
  0x8f   :  { %190 = vst.msk [vmem:[%s435_s3 + $0x50] sm:$0xff] %vm42_vm0, %v151_v31 }
  0x90   :  { %195 = vst.msk [vmem:[%s435_s3 + $0x78] sm:$0xff] %vm42_vm0, %v166_v32  ;;  %v123_v33 = vpop.f32.mrf.mxu0  ;;  %v138_v34 = vpop.f32.mrf.mxu1 }
  0x91   :  { %v124_v35 = vadd.f32 %v236_v24, %v123_v33  ;;  %v139_v36 = vadd.f32 %v236_v24, %v138_v34 }
  0x93   :  { %181 = vst.msk [vmem:[%s435_s3 + $0x8] sm:$0xff] %vm42_vm0, %v124_v35 }
  0x94   :  { %186 = vst.msk [vmem:[%s435_s3 + $0x30] sm:$0xff] %vm42_vm0, %v139_v36  ;;  %v153_v37 = vpop.f32.mrf.mxu2  ;;  %v168_v38 = vpop.f32.mrf.mxu3 }
  0x95   :  { %v154_v39 = vadd.f32 %v236_v24, %v153_v37  ;;  %v169_v40 = vadd.f32 %v236_v24, %v168_v38 }
  0x97   :  { %191 = vst.msk [vmem:[%s435_s3 + $0x58] sm:$0xff] %vm42_vm0, %v154_v39 }
  0x98   :  { %196 = vst.msk [vmem:[%s435_s3 + $0x80] sm:$0xff] %vm42_vm0, %v169_v40  ;;  %v126_v41 = vpop.f32.mrf.mxu0  ;;  %v141_v42 = vpop.f32.mrf.mxu1 }
  0x99   :  { %v127_v43 = vadd.f32 %v236_v24, %v126_v41  ;;  %v142_v44 = vadd.f32 %v236_v24, %v141_v42 }
  0x9b   :  { %182 = vst.msk [vmem:[%s435_s3 + $0x10] sm:$0xff] %vm42_vm0, %v127_v43 }
  0x9c   :  { %187 = vst.msk [vmem:[%s435_s3 + $0x38] sm:$0xff] %vm42_vm0, %v142_v44  ;;  %v156_v45 = vpop.f32.mrf.mxu2  ;;  %v171_v46 = vpop.f32.mrf.mxu3 }
  0x9d   :  { %v157_v47 = vadd.f32 %v236_v24, %v156_v45  ;;  %v172_v48 = vadd.f32 %v236_v24, %v171_v46 }
  0x9f   :  { %192 = vst.msk [vmem:[%s435_s3 + $0x60] sm:$0xff] %vm42_vm0, %v157_v47 }
  0xa0   :  { %197 = vst.msk [vmem:[%s435_s3 + $0x88] sm:$0xff] %vm42_vm0, %v172_v48  ;;  %v129_v49 = vpop.f32.mrf.mxu0  ;;  %v144_v50 = vpop.f32.mrf.mxu1 }
  0xa1   :  { %v130_v51 = vadd.f32 %v236_v24, %v129_v49  ;;  %v145_v52 = vadd.f32 %v236_v24, %v144_v50 }
  0xa3   :  { %183 = vst.msk [vmem:[%s435_s3 + $0x18] sm:$0xff] %vm42_vm0, %v130_v51 }
  0xa4   :  { %188 = vst.msk [vmem:[%s435_s3 + $0x40] sm:$0xff] %vm42_vm0, %v145_v52  ;;  %v159_v53 = vpop.f32.mrf.mxu2  ;;  %v174_v54 = vpop.f32.mrf.mxu3 }
  0xa5   :  { %v160_v55 = vadd.f32 %v236_v24, %v159_v53  ;;  %v175_v56 = vadd.f32 %v236_v24, %v174_v54 }
  0xa7   :  { %193 = vst.msk [vmem:[%s435_s3 + $0x68] sm:$0xff] %vm42_vm0, %v160_v55 }
  0xa8   :  { %198 = vst.msk [vmem:[%s435_s3 + $0x90] sm:$0xff] %vm42_vm0, %v175_v56  ;;  %v132_v57 = vpop.f32.mrf.mxu0  ;;  %v147_v58 = vpop.f32.mrf.mxu1 }
  0xa9   :  { %v133_v59 = vadd.f32 %v236_v24, %v132_v57  ;;  %v148_v60 = vadd.f32 %v236_v24, %v147_v58 }
  0xab   :  { %184 = vst.msk [vmem:[%s435_s3 + $0x20] sm:$0xff] %vm42_vm0, %v133_v59 }
  0xac   :  { %189 = vst.msk [vmem:[%s435_s3 + $0x48] sm:$0xff] %vm42_vm0, %v148_v60  ;;  %v162_v61 = vpop.f32.mrf.mxu2  ;;  %v177_v62 = vpop.f32.mrf.mxu3 }
  0xad   :  { %v163_v63 = vadd.f32 %v236_v24, %v162_v61  ;;  %v178_v0 = vadd.f32 %v236_v24, %v177_v62 }
  0xaf   :  { %194 = vst.msk [vmem:[%s435_s3 + $0x70] sm:$0xff] %vm42_vm0, %v163_v63 }
  0xb0   :  { %199 = vst.msk [vmem:[%s435_s3 + $0x98] sm:$0xff] %vm42_vm0, %v178_v0 }

</bundles_post_ra>
